<compile_context>
chip_gen: v6e
topology: v6e:2x2x1
jax: 0.10.0
libtpu: 0.0.40
codegen_flags: <defaults>
</compile_context>

<pallas_src>
import functools

import jax
import jax.numpy as jnp
from jax.experimental import pallas as pl
from jax.experimental.pallas import tpu as pltpu


# ---------------------------------------------------------------------------
# Kernels
# ---------------------------------------------------------------------------

def _se_fused_kernel(x_ref, w1t_ref, w2t_ref, o_ref, *, inv_hw):
    """Single-pass SE: pool -> FC -> ReLU -> FC -> sigmoid -> scale.

    x_ref/o_ref: (Bb, C, HW); w1t_ref: (C, Cr); w2t_ref: (Cr, C).
    """
    # Squeeze: f32-accumulated global average pool straight off the ref.
    pooled = jnp.sum(x_ref[...], axis=-1, dtype=jnp.float32) * inv_hw     # (Bb, C)

    # Excitation (tiny, f32): Linear -> ReLU -> Linear -> Sigmoid.
    h = jnp.dot(pooled, w1t_ref[...], preferred_element_type=jnp.float32)
    h = jnp.maximum(h, 0.0)                                               # (Bb, Cr)
    y = jnp.dot(h, w2t_ref[...], preferred_element_type=jnp.float32)
    y = jax.nn.sigmoid(y)                                                 # (Bb, C)

    # Scale: re-read the ref (keeps the multi-MiB tile out of live vregs across
    # the FC/sigmoid chain).  Gate is cast to the input dtype before the
    # multiply — for bf16 inputs this rounds the gate slightly vs. an f32 ref.
    gate = y.astype(o_ref.dtype)[:, :, None]                              # (Bb, C, 1)
    o_ref[...] = x_ref[...] * gate


def _se_pool_gate_kernel(x_ref, w1t_ref, w2t_ref, gate_ref, acc_ref, *,
                         inv_hw, hw, hw_tile):
    """Two-phase fallback, phase 1: spatially tiled pool + gate.

    Grid = (batch, spatial_tiles); the spatial axis is an 'arbitrary' reduction.
    x_ref: (1, C, hw_tile); gate_ref: (1, C, 1); acc_ref: (1, C) f32 scratch.
    """
    s = pl.program_id(1)

    @pl.when(s == 0)
    def _():
        acc_ref[...] = jnp.zeros_like(acc_ref)

    x = x_ref[...]
    # Mask lanes past the true spatial extent (ragged last tile reads garbage).
    lane = jax.lax.broadcasted_iota(jnp.int32, x.shape, 2) + s * hw_tile
    xf = jnp.where(lane < hw, x.astype(jnp.float32), 0.0)
    acc_ref[...] += jnp.sum(xf, axis=-1)                                  # (1, C)

    @pl.when(s == pl.num_programs(1) - 1)
    def _():
        pooled = acc_ref[...] * inv_hw                                    # (1, C)
        h = jnp.dot(pooled, w1t_ref[...], preferred_element_type=jnp.float32)
        h = jnp.maximum(h, 0.0)
        y = jax.nn.sigmoid(
            jnp.dot(h, w2t_ref[...], preferred_element_type=jnp.float32))
        gate_ref[...] = y.astype(gate_ref.dtype)[:, :, None]              # (1, C, 1)


def _se_scale_kernel(x_ref, gate_ref, o_ref):
    """Two-phase fallback, phase 2: broadcast the per-channel gate and scale."""
    o_ref[...] = x_ref[...] * gate_ref[...].astype(o_ref.dtype)


# ---------------------------------------------------------------------------
# Sizing helpers
# ---------------------------------------------------------------------------

def _vmem_capacity_bytes():
    try:
        info = pltpu.get_tpu_info()
        for name in ("vmem_capacity_bytes", "vmem_bytes", "vmem_size_bytes"):
            v = getattr(info, name, None)
            if v:
                return int(v)
    except Exception:
        pass
    return 64 * 1024 * 1024  # conservative (v7x-sized) default


def _tensorcores_per_device():
    try:
        kind = (getattr(jax.devices()[0], "device_kind", "") or "").lower()
        if any(tag in kind for tag in ("v4", "v5p", "v7", "7x")):
            return 2  # dual-TensorCore chips
    except Exception:
        pass
    return 1  # v5e / v6e


def _pick_batch_block(batch, per_batch_bytes, footprint_budget_bytes, num_cores):
    """Largest divisor of `batch` whose double-buffered in+out footprint
    (4 * Bb * per_batch_bytes) fits the budget.  On dual-TC chips prefer a step
    count that splits evenly across cores; single-TC chips just take the
    largest fitting tile.  Returns None if even Bb=1 does not fit."""
    divisors = [d for d in range(1, batch + 1) if batch % d == 0]
    fitting = [d for d in divisors
               if 4 * d * per_batch_bytes <= footprint_budget_bytes]
    if not fitting:
        return None
    bb = max(fitting)
    if num_cores > 1 and batch >= num_cores:
        balanced = [d for d in fitting if (batch // d) % num_cores == 0]
        if balanced:
            bb = max(balanced)
    return bb


# ---------------------------------------------------------------------------
# Wrapper
# ---------------------------------------------------------------------------

def se_block(x, w1, w2, *, footprint_budget_bytes=None,
             force_two_phase=False, spatial_tile=None):
    """SEBlock forward. x: (B, C, H, W); w1: (Cr, C); w2: (C, Cr)."""
    B, C, H, W = x.shape
    Cr = w1.shape[0]
    HW = H * W
    itemsize = x.dtype.itemsize

    # No padding/slicing in the wrapper: blocks cover the full (C, HW) extents.
    x_flat = x.reshape(B, C, HW)

    # Pre-transposed tiny FC weights stay VMEM-resident (constant index_map).
    w1t = jnp.transpose(w1)  # (C, Cr)
    w2t = jnp.transpose(w2)  # (Cr, C)

    capacity = _vmem_capacity_bytes()
    num_cores = _tensorcores_per_device()
    if footprint_budget_bytes is None:
        # ~40% of physical VMEM for the pipelined in+out tiles:
        # v5e/v6e (128 MiB) -> ~51 MiB, v7x (64 MiB) -> ~25 MiB.
        footprint_budget_bytes = int(capacity * 0.4)
    footprint_budget_bytes = max(8 << 20, min(footprint_budget_bytes, 56 << 20))
    vmem_cap = max(32 << 20, capacity - (16 << 20))  # headroom for scratch

    inv_hw = 1.0 / HW
    per_batch_bytes = C * HW * itemsize

    bb = None if force_two_phase else _pick_batch_block(
        B, per_batch_bytes, footprint_budget_bytes, num_cores)

    if bb is not None:
        # ------------------- fused single-pass path -------------------
        tile_bytes = bb * per_batch_bytes
        vmem_limit = int(min(vmem_cap, max(32 << 20, 4 * tile_bytes + (4 << 20))))
        cost = pl.CostEstimate(
            flops=3 * B * C * HW + 4 * B * C * Cr,
            transcendentals=B * C,
            bytes_accessed=2 * B * C * HW * itemsize + 2 * C * Cr * 4,
        )
        out_flat = pl.pallas_call(
            functools.partial(_se_fused_kernel, inv_hw=inv_hw),
            out_shape=jax.ShapeDtypeStruct((B, C, HW), x.dtype),
            grid_spec=pltpu.PrefetchScalarGridSpec(
                num_scalar_prefetch=0,
                grid=(B // bb,),
                in_specs=[
                    pl.BlockSpec((bb, C, HW), lambda b: (b, 0, 0)),
                    pl.BlockSpec((C, Cr), lambda b: (0, 0)),
                    pl.BlockSpec((Cr, C), lambda b: (0, 0)),
                ],
                out_specs=pl.BlockSpec((bb, C, HW), lambda b: (b, 0, 0)),
            ),
            compiler_params=pltpu.CompilerParams(
                dimension_semantics=("parallel",),
                vmem_limit_bytes=vmem_limit,
            ),
            cost_estimate=cost,
        )(x_flat, w1t, w2t)
        return out_flat.reshape(B, C, H, W)

    # ------------- two-phase pool-then-scale fallback -------------
    # A single (C, HW) slab exceeds the budget (large C*HW; mainly v7x / 64 MiB):
    # tile the spatial axis instead, masking the ragged tail in the pool pass.
    # TODO(synk): add a channel-tiled variant for the pathological huge-C /
    # tiny-HW case where even one spatial tile exceeds the budget.
    if spatial_tile is not None:
        hw_tile = spatial_tile
    elif HW <= 128:
        hw_tile = HW
    else:
        max_tile = max(128, (footprint_budget_bytes // (4 * C * itemsize)) // 128 * 128)
        hw_tile = min(max_tile, ((HW + 127) // 128) * 128)
    n_s = pl.cdiv(HW, hw_tile)
    tile_bytes = C * hw_tile * itemsize
    vmem_limit = int(min(vmem_cap, max(32 << 20, 4 * tile_bytes + (4 << 20))))

    gate = pl.pallas_call(
        functools.partial(_se_pool_gate_kernel, inv_hw=inv_hw, hw=HW,
                          hw_tile=hw_tile),
        out_shape=jax.ShapeDtypeStruct((B, C, 1), x.dtype),
        grid_spec=pltpu.PrefetchScalarGridSpec(
            num_scalar_prefetch=0,
            grid=(B, n_s),
            in_specs=[
                pl.BlockSpec((1, C, hw_tile), lambda b, s: (b, 0, s)),
                pl.BlockSpec((C, Cr), lambda b, s: (0, 0)),
                pl.BlockSpec((Cr, C), lambda b, s: (0, 0)),
            ],
            out_specs=pl.BlockSpec((1, C, 1), lambda b, s: (b, 0, 0)),
            scratch_shapes=[pltpu.VMEM((1, C), jnp.float32)],
        ),
        compiler_params=pltpu.CompilerParams(
            dimension_semantics=("parallel", "arbitrary"),
            vmem_limit_bytes=vmem_limit,
        ),
    )(x_flat, w1t, w2t)

    out_flat = pl.pallas_call(
        _se_scale_kernel,
        out_shape=jax.ShapeDtypeStruct((B, C, HW), x.dtype),
        grid_spec=pltpu.PrefetchScalarGridSpec(
            num_scalar_prefetch=0,
            grid=(B, n_s),
            in_specs=[
                pl.BlockSpec((1, C, hw_tile), lambda b, s: (b, 0, s)),
                pl.BlockSpec((1, C, 1), lambda b, s: (b, 0, 0)),
            ],
            out_specs=pl.BlockSpec((1, C, hw_tile), lambda b, s: (b, 0, s)),
        ),
        compiler_params=pltpu.CompilerParams(
            dimension_semantics=("parallel", "parallel"),
            vmem_limit_bytes=vmem_limit,
        ),
    )(x_flat, gate)
    return out_flat.reshape(B, C, H, W)


def se_block_reference(x, w1, w2):
    """Pure-JAX reference mirroring the PyTorch forward."""
    y = jnp.mean(x, axis=(2, 3))                    # (B, C)
    y = jnp.maximum(y @ w1.T, 0.0)                  # (B, Cr)
    y = jax.nn.sigmoid(y @ w2.T)                    # (B, C)
    return x * y[:, :, None, None]


if __name__ == "__main__":
    key = jax.random.PRNGKey(0)
    kx, k1, k2, kx2 = jax.random.split(key, 4)

    B, C, H, W = 2, 4, 16, 16
    reduction = 16
    Cr = max(C // reduction, 1)

    x = jax.random.normal(kx, (B, C, H, W), dtype=jnp.float32)
    # Deterministic synthetic Linear weights (bias=False, PyTorch-like uniform init)
    bound1 = 1.0 / (C ** 0.5)
    bound2 = 1.0 / (Cr ** 0.5)
    w1 = jax.random.uniform(k1, (Cr, C), jnp.float32, -bound1, bound1)
    w2 = jax.random.uniform(k2, (C, Cr), jnp.float32, -bound2, bound2)

    # Fused single-pass path (the common case).
    out = jax.block_until_ready(se_block(x, w1, w2))
    ref = se_block_reference(x, w1, w2)
    assert out.shape == (B, C, H, W)
    assert jnp.allclose(out, ref, atol=1e-5, rtol=1e-5), "fused path mismatch"

    # Two-phase fallback path, exercised at a ragged spatial size (12*12 = 144)
    # with a forced 128-wide spatial tile so the masked tail + accumulator run.
    x2 = jax.random.normal(kx2, (B, C, 12, 12), dtype=jnp.float32)
    out2 = jax.block_until_ready(
        se_block(x2, w1, w2, force_two_phase=True, spatial_tile=128))
    ref2 = se_block_reference(x2, w1, w2)
    assert out2.shape == x2.shape
    assert jnp.allclose(out2, ref2, atol=1e-5, rtol=1e-5), "two-phase path mismatch"

    print("KERNEL_OK")
</pallas_src>

<mosaic_0001>
module attributes {stable_mosaic.version = 11 : i64} {
  func.func @_se_fused_kernel(%arg0: i32, %arg1: memref<2x4x256xf32, #tpu.memory_space<vmem>>, %arg2: memref<4x1xf32, #tpu.memory_space<vmem>>, %arg3: memref<1x4xf32, #tpu.memory_space<vmem>>, %arg4: memref<2x4x256xf32, #tpu.memory_space<vmem>>) attributes {dimension_semantics = [#tpu.dimension_semantics<parallel>], iteration_bounds = array<i64: 1>, scalar_prefetch = 0 : i64, scratch_operands = 0 : i64, tpu.core_type = #tpu.core_type<tc>, window_params = [{transform_indices = @transform_0, window_bounds = array<i64: 2, 4, 256>}, {pipeline_mode = #tpu.pipeline_mode<synchronous>, transform_indices = @transform_1, window_bounds = array<i64: 4, 1>}, {pipeline_mode = #tpu.pipeline_mode<synchronous>, transform_indices = @transform_2, window_bounds = array<i64: 1, 4>}, {transform_indices = @transform_3, window_bounds = array<i64: 2, 4, 256>}]} {
    %c0 = arith.constant 0 : index
    %c0_0 = arith.constant 0 : index
    %c0_1 = arith.constant 0 : index
    %0 = vector.load %arg1[%c0, %c0_0, %c0_1] : memref<2x4x256xf32, #tpu.memory_space<vmem>>, vector<2x4x256xf32>
    %cst = arith.constant dense<0.000000e+00> : vector<2x4xf32>
    %1 = vector.multi_reduction <add>, %0, %cst [2] : vector<2x4x256xf32> to vector<2x4xf32>
    %cst_2 = arith.constant 3.906250e-03 : f32
    %2 = vector.broadcast %cst_2 : f32 to vector<2x4xf32>
    %3 = arith.mulf %1, %2 : vector<2x4xf32>
    %c0_3 = arith.constant 0 : index
    %c0_4 = arith.constant 0 : index
    %4 = vector.load %arg2[%c0_3, %c0_4] : memref<4x1xf32, #tpu.memory_space<vmem>>, vector<4x1xf32>
    %cst_5 = arith.constant dense<0.000000e+00> : vector<2x1xf32>
    %5 = tpu.matmul %3, %4, %cst_5 {dimension_numbers = #tpu.dot_dimension_numbers<[1], [0], [0], [1], [0, 0, 1, 1], [], []>} : vector<2x4xf32>, vector<4x1xf32>, vector<2x1xf32> -> vector<2x1xf32>
    %cst_6 = arith.constant 0.000000e+00 : f32
    %6 = vector.broadcast %cst_6 : f32 to vector<2x1xf32>
    %7 = arith.maximumf %5, %6 : vector<2x1xf32>
    %c0_7 = arith.constant 0 : index
    %c0_8 = arith.constant 0 : index
    %8 = vector.load %arg3[%c0_7, %c0_8] : memref<1x4xf32, #tpu.memory_space<vmem>>, vector<1x4xf32>
    %cst_9 = arith.constant dense<0.000000e+00> : vector<2x4xf32>
    %9 = tpu.matmul %7, %8, %cst_9 {dimension_numbers = #tpu.dot_dimension_numbers<[1], [0], [0], [1], [0, 0, 1, 1], [], []>} : vector<2x1xf32>, vector<1x4xf32>, vector<2x4xf32> -> vector<2x4xf32>
    %10 = arith.negf %9 : vector<2x4xf32>
    %11 = math.exp %10 : vector<2x4xf32>
    %cst_10 = arith.constant 1.000000e+00 : f32
    %12 = vector.broadcast %cst_10 : f32 to vector<2x4xf32>
    %13 = arith.addf %12, %11 : vector<2x4xf32>
    %14 = arith.divf %12, %13 : vector<2x4xf32>
    %15 = vector.shape_cast %14 : vector<2x4xf32> to vector<2x4x1xf32>
    %c0_11 = arith.constant 0 : index
    %c0_12 = arith.constant 0 : index
    %c0_13 = arith.constant 0 : index
    %16 = vector.load %arg1[%c0_11, %c0_12, %c0_13] : memref<2x4x256xf32, #tpu.memory_space<vmem>>, vector<2x4x256xf32>
    %17 = vector.broadcast %15 : vector<2x4x1xf32> to vector<2x4x256xf32>
    %18 = arith.mulf %16, %17 : vector<2x4x256xf32>
    %c0_14 = arith.constant 0 : index
    %c0_15 = arith.constant 0 : index
    %c0_16 = arith.constant 0 : index
    %19 = vector.load %arg4[%c0_14, %c0_15, %c0_16] : memref<2x4x256xf32, #tpu.memory_space<vmem>>, vector<2x4x256xf32>
    tpu.vector_store %arg4[%c0_14, %c0_15, %c0_16], %18 {strides = array<i32>} : memref<2x4x256xf32, #tpu.memory_space<vmem>>, vector<2x4x256xf32>,
    return
  }
  func.func @transform_0(%arg0: i32) -> (i32, i32, i32) {
    %c0_i32 = arith.constant 0 : i32
    %c0_i32_0 = arith.constant 0 : i32
    %c0_i32_1 = arith.constant 0 : i32
    return %arg0, %c0_i32, %c0_i32_0 : i32, i32, i32
  }
  func.func @transform_1(%arg0: i32) -> (i32, i32) {
    %c0_i32 = arith.constant 0 : i32
    %c0_i32_0 = arith.constant 0 : i32
    %c0_i32_1 = arith.constant 0 : i32
    return %c0_i32, %c0_i32_0 : i32, i32
  }
  func.func @transform_2(%arg0: i32) -> (i32, i32) {
    %c0_i32 = arith.constant 0 : i32
    %c0_i32_0 = arith.constant 0 : i32
    %c0_i32_1 = arith.constant 0 : i32
    return %c0_i32, %c0_i32_0 : i32, i32
  }
  func.func @transform_3(%arg0: i32) -> (i32, i32, i32) {
    %c0_i32 = arith.constant 0 : i32
    %c0_i32_0 = arith.constant 0 : i32
    %c0_i32_1 = arith.constant 0 : i32
    return %arg0, %c0_i32, %c0_i32_0 : i32, i32, i32
  }
}

</mosaic_0001>

<bundles_post_ra>
// kernel: tpu_custom_call.1
= control target key start
LH: loop header
LB: loop body
LE: loop exit
PB: predicated region body
PF: predicated region fallthrough
CT: control target
= control target key end

     0   :  { %8 = vsyncpa [#allocation3], 0  ;;  %s412_s0 = inlined_call_operand.hbm [shape: f32[2,4,256], index: 0, kind: input, shape index: {}]   ;;  %s413_s1 = inlined_call_operand.vmem [shape: f32[4,1], index: 1, kind: input, shape index: {}]   ;;  %s414_s2 = inlined_call_operand.vmem [shape: f32[1,4], index: 2, kind: input, shape index: {}]   ;;  %s415_s3 = inlined_call_operand.hbm [shape: f32[2,4,256], index: 3, kind: output, shape index: {}]  }
   0x1   :  { %9 = vsyncpa [#allocation4], 0  ;;  %s356_s12 = smov [#allocation2]  }
   0x2   :  { %s15_s13 = sshll.u32 %s356_s12, 4  ;;  %s16_s13 = int_to_ptr.vmem [resolvable:$true] %s15_s13 }
   0x3   :  { %s320_s14 = scalar_lea.vmem %s16_s13, 256  ;;  %p325_p1 = scmp.lt.s32.totalorder %s16_s13, %s16_s13 }
   0x4   :  { %p321_p0 = scmp.ne.s32.totalorder %s16_s13, %s320_s14  ;;  %p326_p2 = scmp.lt.s32.totalorder %s320_s14, %s320_s14 }
   0x6   :  { %p327_p3 = por %p326_p2, %p325_p1 }
   0x8   :  { %p328_p4 = pnand %p327_p3, %p321_p0 }
   0xa   :  { %331 = shalt.err (!%p328_p4)
}
   0xb   :  { %s357_s15 = smov 128   ;;  %s358_s16 = smov 8  }
   0xc   :  { %21 = dma.hbm_to_vmem [thread:$0]  %s412_s0, 256, %s16_s13, [#allocation3], %s357_s15, %s357_s15, %s358_s16  }
   0xd   :  { %352 = dma.done.wait [#allocation3], 256  }
   0xe   :  { %353 = vsyncadd [#allocation3], 4294967040  ;;  %vm37_vm0 = vcmask 1043456   ;;  %v29_v0 = vld [vmem:[#allocation2] sm:$0xff]  ;;  %v389_v1 = vld [vmem:[#allocation2 + $0x8] sm:$0xff]  ;;  %v359_v11 = vmov 0.0   ;;  %v53_v12 = vlaneseq }
   0xf   :  { %v33_v2 = vcombine.high %v29_v0, %v29_v0  ;;  %v38_v3 = vsel %vm37_vm0, %v29_v0, 0.0  ;;  %v34_v4 = vcombine.high %v389_v1, %v389_v1  ;;  %v43_v6 = vsel %vm37_vm0, %v389_v1, 0.0  ;;  %v50_v10 = vld [vmem:[%s413_s1] sm:$0xf]  ;;  %289 = vmatprep.subr.mxu0 %v359_v11  ;;  %294 = vmatprep.subr.mxu1 %v359_v11 }
  0x10   :  { %vm360_vm1 = vmmov 0   ;;  %290 = vmatpush3.msk.msra.mxu0 %vm37_vm0, %v50_v10  ;;  %v54_v13 = vand.u32 127, %v53_v12  ;;  %v56_v14 = vshrl.u32 %v53_v12, 7  ;;  %vm63_vm2 = vcmask 1041409   ;;  %v142_v23 = vld [vmem:[%s414_s2] sm:$0x1] }
  0x11   :  { %v39_v5 = vsel %vm37_vm0, %v33_v2, 0.0  ;;  %v44_v7 = vsel %vm37_vm0, %v34_v4, 0.0  ;;  %291 = vmatprep.mubr.msk.f32.mxu0 %vm360_vm1, %v359_v11  ;;  %296 = vmatprep.mubr.msk.f32.mxu1 %vm360_vm1, %v359_v11  ;;  %vm65_vm3 = vcmask 31744   ;;  %vm147_vm4 = vcmask 1040384   ;;  %s362_s2 = smov [#allocation5]  }
  0x12   :  { %v40_v8 = vadd.f32 %v39_v5, %v38_v3  ;;  %v45_v9 = vadd.f32 %v44_v7, %v43_v6  ;;  %v57_v16 = vsub.s32 %v54_v13, %v56_v14  ;;  %295 = vmatpush3.msk.msra.mxu1 %vm147_vm4, %v142_v23  ;;  %vm143_vm5 = vcmask 7168   ;;  %s268_s21 = sshll.u32 %s362_s2, 4  ;;  %s269_s21 = int_to_ptr.vmem [resolvable:$true] %s268_s21 }
  0x13   :  { %v229_v32 = vsub.s32 0, %v56_v14  ;;  %v236_v35 = vsub.s32 1, %v56_v14  ;;  %v361_v37 = vmov 839922192   ;;  %s332_s22 = scalar_lea.vmem %s269_s21, 256  ;;  %p337_p6 = scmp.lt.s32.totalorder %s269_s21, %s269_s21 }
  0x14   :  { %41 = vadd.xlane.f32.xlu0 %v40_v8  ;;  %v244_v38 = vunpack.c.l.s4 %v361_v37  ;;  %p333_p5 = scmp.ne.s32.totalorder %s269_s21, %s332_s22  ;;  %p338_p7 = scmp.lt.s32.totalorder %s332_s22, %s332_s22 }
  0x16   :  { %v245_v39 = vunpack.c.0.s8 %v244_v38  ;;  %p339_p8 = por %p338_p7, %p337_p6 }
  0x18   :  { %46 = vadd.xlane.f32.xlu0 %v45_v9  ;;  %v248_v40 = vsub.s32 %v245_v39, %v56_v14  ;;  %p340_p9 = pnand %p339_p8, %p333_p5 }
  0x9d   :  { %v42_v15 = vpop.xlane.xlu0 %41 }
  0x9e   :  { %v48_v17 = vmul.f32 0.00390625, %v42_v15 }
  0xa0   :  { %v58_v20 = vrot.slane %v48_v17, %v57_v16 }
  0xa1   :  { %v47_v18 = vpop.xlane.xlu0 %46 }
  0xa2   :  { %v49_v19 = vmul.f32 0.00390625, %v47_v18 }
  0xa4   :  { %v62_v21 = vrot.slane %v49_v19, %v57_v16 }
  0xa6   :  { %v64_v22 = vsel %vm63_vm2, %v62_v21, %v58_v20 }
  0xa7   :  { %292 = vmatmul.mubr.msk.f32.vlgmr.msra.gmra.mxu0 %vm65_vm3, %v64_v22 }
 0x167   :  { %v137_v24 = vpop.f32.mrf.mxu0 }
 0x168   :  { %v141_v25 = vmax.f32 %v137_v24, 0.0 }
 0x169   :  { %v293_v26 = vpop.f32.mrf.mxu0 }
 0x16a   :  { %297 = vmatmul.mubr.msk.f32.vlgmr.msra.gmra.mxu1 %vm143_vm5, %v141_v25 }
 0x22a   :  { %v217_v27 = vpop.f32.mrf.mxu1 }
 0x22b   :  { %v284_v28 = vmul.f32 -1.442695, %v217_v27 }
 0x22c   :  { %v298_v29 = vpop.f32.mrf.mxu1 }
 0x22d   :  { %308 = vpow2.f32 %v284_v28 }
 0x23a   :  { %v309_v30 = vpop.eup %308 }
 0x23b   :  { %v224_v31 = vadd.f32 1.0, %v309_v30 }
 0x23d   :  { %310 = vrcp.f32 %v224_v31 }
 0x24a   :  { %v311_v33 = vpop.eup %310 }
 0x24b   :  { %v230_v34 = vrot.slane %v311_v33, %v229_v32  ;;  %v237_v36 = vrot.slane %v311_v33, %v236_v35 }
 0x24d   :  { %232 = vbcast.lane.b32.xlu1 %v230_v34, 256 }
 0x251   :  { %239 = vbcast.lane.b32.xlu1 %v237_v36, 256 }
 0x2bf   :  { %v233_v41 = vpop.permute.xlu1 %232 }
 0x2c0   :  { %v249_v42 = vrot.slane %v233_v41, %v248_v40 }
 0x2c2   :  { %v259_v43 = vmul.f32 %v249_v42, %v29_v0 }
 0x2c3   :  { %v240_v44 = vpop.permute.xlu1 %239 }
 0x2c4   :  { %261 = vst [vmem:[#allocation5] sm:$0xff] %v259_v43  ;;  %v256_v45 = vrot.slane %v240_v44, %v248_v40 }
 0x2c6   :  { %v260_v46 = vmul.f32 %v256_v45, %v389_v1 }
 0x2c8   :  { %262 = vst [vmem:[#allocation5 + $0x8] sm:$0xff] %v260_v46 }
 0x2c9   :  { %343 = shalt.err (!%p340_p9)
}
 0x2ca   :  { %274 = dma.vmem_to_hbm [thread:$0]  %s269_s21, 256, %s415_s3, [#allocation4], %s357_s15, %s357_s15, %s358_s16  }
 0x2cb   :  { %354 = dma.done.wait [#allocation4], 256  }
 0x2cc   :  { %355 = vsyncadd [#allocation4], 4294967040 }
 0x2cd   :  { %278 = vsyncpa [#allocation3], 1 }
 0x2ce   :  { %279 = vsyncpa [#allocation4], 1 }

</bundles_post_ra>
